<compile_context>
chip_gen: v7x
topology: tpu7x:2x2x1
jax: 0.10.0
libtpu: 0.0.40
codegen_flags: <defaults>
</compile_context>

<pallas_src>
import functools

import jax
import jax.numpy as jnp
from jax.experimental import pallas as pl
from jax.experimental.pallas import tpu as pltpu


def _denoising_block_kernel(z_ref, x_ref, p_ref, out_ref):
    """Fused MLP: out = relu([z, x] @ W1 + b1) @ W2 + b2.

    p_ref layout (rows, hidden):
      rows [0, d_cat)            : W1   (d_cat = embed_dim + input_dim)
      rows [d_cat, d_cat+hidden) : W2   (only lanes [0, embed_dim) are real)
      row  d_cat+hidden          : b1
      row  d_cat+hidden+8        : b2   (only lanes [0, embed_dim) are real)
    All slice starts are multiples of 8 (sublane aligned) and lane offset 0.
    """
    embed_dim = z_ref.shape[1]
    input_dim = x_ref.shape[1]
    hidden = p_ref.shape[1]
    d_cat = embed_dim + input_dim
    b1_row = d_cat + hidden
    b2_row = b1_row + 8

    w1_z = p_ref[0:embed_dim, :]                    # (embed_dim, hidden)
    w1_x = p_ref[embed_dim:d_cat, :]                # (input_dim, hidden)
    w2 = p_ref[d_cat:b1_row, 0:embed_dim]           # (hidden, embed_dim)
    b1 = p_ref[b1_row:b1_row + 1, :]                # (1, hidden)
    b2 = p_ref[b2_row:b2_row + 1, 0:embed_dim]      # (1, embed_dim)

    # First layer: concat folded into two MXU dots against row-splits of W1.
    h = jnp.dot(z_ref[...], w1_z, preferred_element_type=jnp.float32)
    h = h + jnp.dot(x_ref[...], w1_x, preferred_element_type=jnp.float32)
    h = jnp.maximum(h + b1, 0.0)                    # bias + ReLU, f32 on the VPU

    # Second layer.
    y = jnp.dot(h, w2, preferred_element_type=jnp.float32) + b2
    out_ref[...] = y.astype(out_ref.dtype)


def pack_params(w1, b1, w2, b2):
    """One-time parameter prep: pack W1, W2, b1, b2 into a single f32 slab.

    w1: (input_dim + embed_dim, hidden)  rows ordered [z_prev rows; x rows]
    w2: (hidden, embed_dim)
    b1: (hidden,), b2: (embed_dim,)
    Returns (d_cat + hidden + 16, hidden) array.
    """
    d_cat, hidden = w1.shape
    hidden2, embed_dim = w2.shape
    assert hidden == hidden2
    assert b1.shape == (hidden,) and b2.shape == (embed_dim,)
    # Alignment requirements for the free in-kernel sublane slices.
    assert embed_dim % 8 == 0, "embed_dim must be a multiple of 8"
    assert d_cat % 8 == 0, "input_dim + embed_dim must be a multiple of 8"
    assert hidden % 8 == 0, "hidden must be a multiple of 8"
    assert embed_dim <= hidden

    b1_row = d_cat + hidden
    b2_row = b1_row + 8
    total_rows = b2_row + 8

    p = jnp.zeros((total_rows, hidden), dtype=jnp.float32)
    p = p.at[0:d_cat, :].set(w1.astype(jnp.float32))
    p = p.at[d_cat:d_cat + hidden, 0:embed_dim].set(w2.astype(jnp.float32))
    p = p.at[b1_row, :].set(b1.astype(jnp.float32))
    p = p.at[b2_row, 0:embed_dim].set(b2.astype(jnp.float32))
    return p


@jax.jit
def denoising_block(z_prev, x, params):
    """JAX wrapper reproducing DenoisingBlock.forward.

    z_prev: (B, embed_dim), x: (B, input_dim)
    params: packed slab from pack_params()
    returns: (B, embed_dim)
    """
    B, embed_dim = z_prev.shape
    input_dim = x.shape[1]

    # Batch tile: up to 256 rows (v6e/v7x MXU width); small batches round up to
    # a multiple of 8 sublanes and run as a single grid step.
    if B >= 256:
        tb = 256
    else:
        tb = max(8, ((B + 7) // 8) * 8)
    n_tiles = pl.cdiv(B, tb)
    padded_b = n_tiles * tb

    if padded_b != B:
        pad = padded_b - B
        z_p = jnp.pad(z_prev, ((0, pad), (0, 0)))
        x_p = jnp.pad(x, ((0, pad), (0, 0)))
    else:
        z_p, x_p = z_prev, x

    out = pl.pallas_call(
        _denoising_block_kernel,
        out_shape=jax.ShapeDtypeStruct((padded_b, embed_dim), z_prev.dtype),
        grid_spec=pltpu.PrefetchScalarGridSpec(
            num_scalar_prefetch=0,
            grid=(n_tiles,),
            in_specs=[
                pl.BlockSpec((tb, embed_dim), lambda i: (i, 0)),
                pl.BlockSpec((tb, input_dim), lambda i: (i, 0)),
                # Parameter slab: one DMA, resident across all batch tiles.
                pl.BlockSpec(params.shape, lambda i: (0, 0)),
            ],
            out_specs=pl.BlockSpec((tb, embed_dim), lambda i: (i, 0)),
        ),
        compiler_params=pltpu.CompilerParams(
            dimension_semantics=("parallel",)),
    )(z_p, x_p, params)

    return out[:B] if padded_b != B else out


def _reference(z_prev, x, w1, b1, w2, b2):
    x_embed = jnp.concatenate([z_prev, x], axis=1)
    return jnp.maximum(x_embed @ w1 + b1, 0.0) @ w2 + b2


if __name__ == "__main__":
    # Small shapes consistent with the module: input_dim=16, embed_dim=32.
    input_dim, embed_dim, hidden = 16, 32, 64
    d_cat = input_dim + embed_dim

    key = jax.random.PRNGKey(0)
    k_z, k_x, k_w1, k_b1, k_w2, k_b2, k_z2, k_x2 = jax.random.split(key, 8)

    # Deterministic synthetic parameters (nn.Linear shapes, stored as
    # (in_features, out_features) so y = x @ W + b; W1 rows ordered
    # [z_prev rows; x rows] to match torch.cat([z_prev, x], dim=1)).
    w1 = jax.random.normal(k_w1, (d_cat, hidden), dtype=jnp.float32) / jnp.sqrt(d_cat)
    b1 = jax.random.normal(k_b1, (hidden,), dtype=jnp.float32) * 0.01
    w2 = jax.random.normal(k_w2, (hidden, embed_dim), dtype=jnp.float32) / jnp.sqrt(hidden)
    b2 = jax.random.normal(k_b2, (embed_dim,), dtype=jnp.float32) * 0.01

    # One-time parameter prep (not part of the per-call forward path).
    params = pack_params(w1, b1, w2, b2)

    # --- Case 1: tiny batch (single grid step) -------------------------------
    B = 8
    z_prev = jax.random.normal(k_z, (B, embed_dim), dtype=jnp.float32)
    x = jax.random.normal(k_x, (B, input_dim), dtype=jnp.float32)

    out = jax.block_until_ready(denoising_block(z_prev, x, params))
    ref = _reference(z_prev, x, w1, b1, w2, b2)
    assert out.shape == (B, embed_dim)
    assert jnp.allclose(out, ref, atol=1e-4, rtol=1e-4)

    # --- Case 2: batch > one tile (exercises grid + padding + resident weights)
    B2 = 260
    z2 = jax.random.normal(k_z2, (B2, embed_dim), dtype=jnp.float32)
    x2 = jax.random.normal(k_x2, (B2, input_dim), dtype=jnp.float32)

    out2 = jax.block_until_ready(denoising_block(z2, x2, params))
    ref2 = _reference(z2, x2, w1, b1, w2, b2)
    assert out2.shape == (B2, embed_dim)
    assert jnp.allclose(out2, ref2, atol=1e-4, rtol=1e-4)

    print("KERNEL_OK")
</pallas_src>

<mosaic_0001>
module attributes {stable_mosaic.version = 11 : i64} {
  func.func @_denoising_block_kernel(%arg0: i32, %arg1: memref<8x32xf32, #tpu.memory_space<vmem>>, %arg2: memref<8x16xf32, #tpu.memory_space<vmem>>, %arg3: memref<128x64xf32, #tpu.memory_space<vmem>>, %arg4: memref<8x32xf32, #tpu.memory_space<vmem>>) attributes {dimension_semantics = [#tpu.dimension_semantics<parallel>], iteration_bounds = array<i64: 1>, scalar_prefetch = 0 : i64, scratch_operands = 0 : i64, tpu.core_type = #tpu.core_type<tc>, window_params = [{transform_indices = @transform_0, window_bounds = array<i64: 8, 32>}, {transform_indices = @transform_1, window_bounds = array<i64: 8, 16>}, {pipeline_mode = #tpu.pipeline_mode<synchronous>, transform_indices = @transform_2, window_bounds = array<i64: 128, 64>}, {transform_indices = @transform_3, window_bounds = array<i64: 8, 32>}]} {
    %c0 = arith.constant 0 : index
    %c0_0 = arith.constant 0 : index
    %0 = vector.load %arg3[%c0, %c0_0] : memref<128x64xf32, #tpu.memory_space<vmem>>, vector<32x64xf32>
    %c32 = arith.constant 32 : index
    %c0_1 = arith.constant 0 : index
    %1 = vector.load %arg3[%c32, %c0_1] : memref<128x64xf32, #tpu.memory_space<vmem>>, vector<16x64xf32>
    %c48 = arith.constant 48 : index
    %c0_2 = arith.constant 0 : index
    %2 = vector.load %arg3[%c48, %c0_2] : memref<128x64xf32, #tpu.memory_space<vmem>>, vector<64x32xf32>
    %c112 = arith.constant 112 : index
    %c0_3 = arith.constant 0 : index
    %3 = vector.load %arg3[%c112, %c0_3] : memref<128x64xf32, #tpu.memory_space<vmem>>, vector<1x64xf32>
    %c120 = arith.constant 120 : index
    %c0_4 = arith.constant 0 : index
    %4 = vector.load %arg3[%c120, %c0_4] : memref<128x64xf32, #tpu.memory_space<vmem>>, vector<1x32xf32>
    %c0_5 = arith.constant 0 : index
    %c0_6 = arith.constant 0 : index
    %5 = vector.load %arg1[%c0_5, %c0_6] : memref<8x32xf32, #tpu.memory_space<vmem>>, vector<8x32xf32>
    %cst = arith.constant dense<0.000000e+00> : vector<8x64xf32>
    %6 = tpu.matmul %5, %0, %cst {dimension_numbers = #tpu.dot_dimension_numbers<[1], [0], [0], [1], [0, 0, 1, 1], [], []>} : vector<8x32xf32>, vector<32x64xf32>, vector<8x64xf32> -> vector<8x64xf32>
    %c0_7 = arith.constant 0 : index
    %c0_8 = arith.constant 0 : index
    %7 = vector.load %arg2[%c0_7, %c0_8] : memref<8x16xf32, #tpu.memory_space<vmem>>, vector<8x16xf32>
    %cst_9 = arith.constant dense<0.000000e+00> : vector<8x64xf32>
    %8 = tpu.matmul %7, %1, %cst_9 {dimension_numbers = #tpu.dot_dimension_numbers<[1], [0], [0], [1], [0, 0, 1, 1], [], []>} : vector<8x16xf32>, vector<16x64xf32>, vector<8x64xf32> -> vector<8x64xf32>
    %9 = arith.addf %6, %8 : vector<8x64xf32>
    %10 = vector.broadcast %3 : vector<1x64xf32> to vector<8x64xf32>
    %11 = arith.addf %9, %10 : vector<8x64xf32>
    %cst_10 = arith.constant 0.000000e+00 : f32
    %12 = vector.broadcast %cst_10 : f32 to vector<8x64xf32>
    %13 = arith.maximumf %11, %12 : vector<8x64xf32>
    %cst_11 = arith.constant dense<0.000000e+00> : vector<8x32xf32>
    %14 = tpu.matmul %13, %2, %cst_11 {dimension_numbers = #tpu.dot_dimension_numbers<[1], [0], [0], [1], [0, 0, 1, 1], [], []>} : vector<8x64xf32>, vector<64x32xf32>, vector<8x32xf32> -> vector<8x32xf32>
    %15 = vector.broadcast %4 : vector<1x32xf32> to vector<8x32xf32>
    %16 = arith.addf %14, %15 : vector<8x32xf32>
    %c0_12 = arith.constant 0 : index
    %c0_13 = arith.constant 0 : index
    %17 = vector.load %arg4[%c0_12, %c0_13] : memref<8x32xf32, #tpu.memory_space<vmem>>, vector<8x32xf32>
    tpu.vector_store %arg4[%c0_12, %c0_13], %16 {strides = array<i32>} : memref<8x32xf32, #tpu.memory_space<vmem>>, vector<8x32xf32>,
    return
  }
  func.func @transform_0(%arg0: i32) -> (i32, i32) {
    %c0_i32 = arith.constant 0 : i32
    %c0_i32_0 = arith.constant 0 : i32
    return %arg0, %c0_i32 : i32, i32
  }
  func.func @transform_1(%arg0: i32) -> (i32, i32) {
    %c0_i32 = arith.constant 0 : i32
    %c0_i32_0 = arith.constant 0 : i32
    return %arg0, %c0_i32 : i32, i32
  }
  func.func @transform_2(%arg0: i32) -> (i32, i32) {
    %c0_i32 = arith.constant 0 : i32
    %c0_i32_0 = arith.constant 0 : i32
    %c0_i32_1 = arith.constant 0 : i32
    return %c0_i32, %c0_i32_0 : i32, i32
  }
  func.func @transform_3(%arg0: i32) -> (i32, i32) {
    %c0_i32 = arith.constant 0 : i32
    %c0_i32_0 = arith.constant 0 : i32
    return %arg0, %c0_i32 : i32, i32
  }
}

</mosaic_0001>

<bundles_post_ra>
// kernel: denoising_block.1
= control target key start
LH: loop header
LB: loop body
LE: loop exit
PB: predicated region body
PF: predicated region fallthrough
CT: control target
= control target key end

     0   :  { %v388_v2 = vmov 0.0|0.0   ;;  %vm389_vm0 = vmmov 0   ;;  %v390_v4 = vmov 0.0   ;;  %s483_s0 = inlined_call_operand.vmem [shape: f32[8,32], index: 0, kind: input, shape index: {}]   ;;  %s484_s1 = inlined_call_operand.vmem [shape: f32[8,16], index: 1, kind: input, shape index: {}]   ;;  %s485_s2 = inlined_call_operand.vmem [shape: f32[128,64], index: 2, kind: input, shape index: {}]   ;;  %s486_s3 = inlined_call_operand.hbm [shape: f32[8,32], index: 3, kind: output, shape index: {}]  }
   0x1   :  { %v19_v0 = vld [vmem:[%s485_s2 + $0x20] sm:$0xff]  ;;  %v20_v1 = vld [vmem:[%s485_s2 + $0x28] sm:$0xff]  ;;  %339 = vmatprep.subr.bf16.mxu1 %v388_v2  ;;  %306 = vmatprep.mubr.msk.f32.mxu1 %vm389_vm0, %v390_v4 }
   0x2   :  { %v340_v3 = vpack.c.bf16 %v20_v1, %v19_v0  ;;  %v15_v5 = vld [vmem:[%s485_s2] sm:$0xff]  ;;  %v16_v6 = vld [vmem:[%s485_s2 + $0x8] sm:$0xff]  ;;  %348 = vmatprep.subr.bf16.mxu0 %v388_v2  ;;  %336 = vmatprep.mubr.msk.f32.mxu0 %vm389_vm0, %v390_v4 }
   0x3   :  { %8 = vsyncpa [#allocation3], 0  ;;  %v32_v7 = vld [vmem:[%s484_s1] sm:$0xff]  ;;  %vm33_vm1 = vcmask 130048   ;;  %v343_v8 = vpack.c.bf16 %v16_v6, %v15_v5  ;;  %v17_v9 = vld [vmem:[%s485_s2 + $0x10] sm:$0xff]  ;;  %vm107_vm2 = vcmask 261120  }
   0x4   :  { %341 = vmatpush3.bf16.msra.mxu1 %v340_v3  ;;  %v18_v10 = vld [vmem:[%s485_s2 + $0x18] sm:$0xff]  ;;  %v31_v12 = vld [vmem:[%s483_s0] sm:$0xff]  ;;  %v21_v13 = vld [vmem:[%s485_s2 + $0x30] sm:$0xff]  ;;  %vm191_vm3 = vcmask 523264   ;;  %s391_s19 = smov [#allocation2]  }
   0x5   :  { %342 = vmatprep.subr.bf16.mxu1 %v388_v2  ;;  %v346_v11 = vpack.c.bf16 %v18_v10, %v17_v9  ;;  %v22_v14 = vld [vmem:[%s485_s2 + $0x38] sm:$0xff]  ;;  %v23_v16 = vld [vmem:[%s485_s2 + $0x40] sm:$0xff]  ;;  %v24_v17 = vld [vmem:[%s485_s2 + $0x48] sm:$0xff]  ;;  %s272_s20 = sshll.u32 %s391_s19, 4  ;;  %s273_s20 = int_to_ptr.vmem [resolvable:$true] %s272_s20 }
   0x6   :  { %v349_v15 = vpack.c.bf16 %v22_v14, %v21_v13  ;;  %v352_v18 = vpack.c.bf16 %v24_v17, %v23_v16  ;;  %v25_v19 = vld [vmem:[%s485_s2 + $0x50] sm:$0xff]  ;;  %v26_v20 = vld [vmem:[%s485_s2 + $0x58] sm:$0xff]  ;;  %v27_v22 = vld [vmem:[%s485_s2 + $0x60] sm:$0xff]  ;;  %s364_s21 = scalar_lea.vmem %s273_s20, 128  ;;  %p369_p1 = scmp.lt.s32.totalorder %s273_s20, %s273_s20 }
   0x7   :  { %307 = vmatmul.mubr.msk.f32.vlgmr.msra.gmra.mrb[0].mxu1 %vm33_vm1, %v32_v7  ;;  %v355_v21 = vpack.c.bf16 %v26_v20, %v25_v19  ;;  %v28_v23 = vld [vmem:[%s485_s2 + $0x68] sm:$0xff]  ;;  %v282_v27 = vld [vmem:[%s485_s2 + $0x70] ss:$0 sm:$0xff]  ;;  %v283_v33 = vld [vmem:[%s485_s2 + $0x78] ss:$0 sm:$0xff]  ;;  %p365_p0 = scmp.ne.s32.totalorder %s273_s20, %s364_s21  ;;  %p370_p2 = scmp.lt.s32.totalorder %s364_s21, %s364_s21 }
   0x8   :  { %344 = vmatpush3.bf16.msra.mxu1 %v343_v8  ;;  %317 = vmatprep.mubr.msk.f32.mxu1 %vm389_vm0, %v390_v4  ;;  %v358_v24 = vpack.c.bf16 %v28_v23, %v27_v22 }
   0x9   :  { %345 = vmatprep.subr.bf16.mxu1 %v388_v2  ;;  %350 = vmatpush3.bf16.msra.mxu0 %v349_v15  ;;  %p371_p3 = por %p370_p2, %p369_p1 }
   0xa   :  { %351 = vmatprep.subr.bf16.mxu0 %v388_v2 }
   0xb   :  { %p372_p4 = pnand %p371_p3, %p365_p0 }
   0xc   :  { %347 = vmatpush3.bf16.msra.mxu1 %v346_v11 }
   0xd   :  { %353 = vmatpush3.bf16.msra.mxu0 %v352_v18 }
   0xe   :  { %354 = vmatprep.subr.bf16.mxu0 %v388_v2 }
   0xf   :  { %318 = vmatmul.mubr.msk.f32.vlgmr.msra.gmra.mrb[2].mxu1 %vm107_vm2, %v31_v12 }
  0x11   :  { %356 = vmatpush3.bf16.msra.mxu0 %v355_v21 }
  0x12   :  { %357 = vmatprep.subr.bf16.mxu0 %v388_v2 }
  0x15   :  { %359 = vmatpush3.bf16.msra.mxu0 %v358_v24 }
  0xda   :  { %v103_v25 = vpop.f32.mrb[0].mxu1 }
  0xdb   :  { %v308_v26 = vpop.f32.mrb[1].mxu1 }
  0xe2   :  { %v177_v28 = vpop.f32.mrb[2].mxu1 }
  0xe3   :  { %v178_v29 = vadd.f32 %v177_v28, %v103_v25  ;;  %v319_v30 = vpop.f32.mrb[3].mxu1 }
  0xe5   :  { %v185_v31 = vadd.f32 %v282_v27, %v178_v29 }
  0xe7   :  { %v186_v32 = vmax.f32 %v185_v31, 0.0 }
  0xe9   :  { %337 = vmatmul.mubr.msk.f32.vlgmr.msra.gmra.mrb[0].mxu0 %vm191_vm3, %v186_v32 }
 0x1bc   :  { %v261_v34 = vpop.f32.mrb[0].mxu0 }
 0x1bd   :  { %v262_v35 = vadd.f32 %v283_v33, %v261_v34  ;;  %v338_v36 = vpop.f32.mrb[1].mxu0 }
 0x1bf   :  { %265 = vst.msk [vmem:[#allocation2] sm:$0xff] %vm107_vm2, %v262_v35 }
 0x1c0   :  { %375 = shalt.err (!%p372_p4)
}
 0x1c1   :  { %s376_s24 = scalar_lea.hbm %s486_s3, 128 }
 0x1c2   :  { %p377_p5 = scmp.ne.s32.totalorder %s486_s3, %s376_s24  ;;  %p380_p6 = scmp.lt.u32.totalorder %s376_s24, %s486_s3 }
 0x1c4   :  { %p382_p7 = pnand %p380_p6, %p377_p5 }
 0x1c6   :  { %385 = shalt.err (!%p382_p7)
}
 0x1c7   :  { %275 = dma.vmem_to_hbm [thread:$0]  %s273_s20, 128, %s486_s3, [#allocation3]  }
 0x1c8   :  { %386 = dma.done.wait [#allocation3], 128  }
 0x1c9   :  { %387 = vsyncadd [#allocation3], 4294967168 }
 0x1ca   :  { %279 = vsyncpa [#allocation3], 1 }

</bundles_post_ra>
